<compile_context>
chip_gen: v7x
topology: tpu7x:2x2x1
jax: 0.10.0
libtpu: 0.0.40
codegen_flags: <defaults>
</compile_context>

<pallas_src>
import math

import numpy as np
import jax
import jax.numpy as jnp
from jax.experimental import pallas as pl

# ----- small config consistent with the module -----
HIDDEN = 32                        # config.hidden_size
QK_DIM = 16                        # config.query_key_dim
NUM_HEADS = 2                      # config.num_attention_heads
V_FACTOR = 2                       # config.v_factor
EXPANSION = HIDDEN * V_FACTOR      # 64
HEAD_DIM = EXPANSION // NUM_HEADS  # 32
KEY_DIM = QK_DIM // NUM_HEADS      # 8
SCALING = KEY_DIM ** -0.5
RMS_EPS = 1e-6
BATCH = 2
SEQ = 8
BT = BATCH * SEQ                   # 16 fused (batch*seq) rows
PROJ_OUT = 2 * EXPANSION + 2 * QK_DIM   # 160 = v(64) | gate(64) | q(16) | k(16)
SLAB = 128                         # packed, lane-dense output width


# ---------------------------------------------------------------------------
# Fully fused kernel (single invocation, batch folded into sublanes):
#   proj = silu(x @ [Wv|Wg|Wq|Wk]); lane-aligned slices
#   xpos rotation as one block-diag 32x32 matmul on the [q|k] slice
#   per-head retention (qk^T with batch-block-diag decay mask, abs-sum norm,
#   @v, RMS group_norm), gate multiply + to_out accumulated per head,
#   one lane-dense (BT, 128) packed writeback.
# ---------------------------------------------------------------------------
def _fused_kernel(x_ref, w_all_ref, wo_ref, rot_ref, cos_ref, sin_ref,
                  mask_ref, gnw_ref, out_ref):
    x = x_ref[...]                                                  # (BT, H)

    # One wide projection matmul + one silu, then lane-tile-aligned slices.
    proj = jax.nn.silu(
        jnp.dot(x, w_all_ref[...], preferred_element_type=jnp.float32))  # (BT,160)
    v = proj[:, 0:EXPANSION]                          # lanes   0: 64 (tile 0)
    gate = proj[:, EXPANSION:2 * EXPANSION]           # lanes  64:128 (tile 0)
    qk_cat = proj[:, 2 * EXPANSION:]                  # lanes 128:160 (tile 1)

    # theta_shift (xpos) on q and k together: rotate_every_two == one
    # block-diagonal right-matmul (pairs never cross head / q-k boundaries).
    rotated = jnp.dot(qk_cat, rot_ref[...], preferred_element_type=jnp.float32)
    shifted = qk_cat * cos_ref[...] + rotated * sin_ref[...]        # (BT, 32)

    qr = shifted[:, :QK_DIM]                                        # (BT, 16)
    kr = shifted[:, QK_DIM:] * SCALING       # scaling commutes with rotation
    k_curr = qk_cat[:, QK_DIM:] * SCALING    # module's k_curr (pre-rotation)

    mask = mask_ref[...]        # (NUM_HEADS, BT, BT), block-diag over batch
    gn_w = gnw_ref[...]         # (1, HEAD_DIM)
    wo = wo_ref[...]            # (EXPANSION, HIDDEN)

    out_acc = jnp.zeros((BT, HIDDEN), jnp.float32)
    for h in range(NUM_HEADS):          # static, unrolled (NUM_HEADS == 2)
        qh = qr[:, h * KEY_DIM:(h + 1) * KEY_DIM]     # (BT, 8)
        kh = kr[:, h * KEY_DIM:(h + 1) * KEY_DIM]     # (BT, 8)
        vh = v[:, h * HEAD_DIM:(h + 1) * HEAD_DIM]    # (BT, 32)

        # qh @ kh.T; cross-batch terms are zeroed by the block-diagonal mask.
        qk = jax.lax.dot_general(qh, kh, (((1,), (1,)), ((), ())),
                                 preferred_element_type=jnp.float32)  # (BT,BT)
        qk = qk * mask[h]
        denom = jnp.clip(jnp.sum(jnp.abs(qk), axis=-1, keepdims=True),
                         1.0, 50000.0)
        qk = qk / denom                     # exact divide (matches reference)

        oh = jnp.dot(qk, vh, preferred_element_type=jnp.float32)     # (BT,32)

        # group_norm == LlamaRMSNorm over head_dim.
        var = jnp.mean(oh * oh, axis=-1, keepdims=True)
        oh = oh * jax.lax.rsqrt(var + RMS_EPS) * gn_w

        # gate + to_out, accumulated per head (no lane concat of attn output).
        gh = gate[:, h * HEAD_DIM:(h + 1) * HEAD_DIM]
        out_acc = out_acc + jnp.dot(
            oh * gh, wo[h * HEAD_DIM:(h + 1) * HEAD_DIM, :],
            preferred_element_type=jnp.float32)

    # Lane-dense packed writeback: [out(32) | k_curr(16) | v_curr(64) | pad].
    pad = jnp.zeros((BT, SLAB - HIDDEN - QK_DIM - EXPANSION), jnp.float32)
    out_ref[...] = jnp.concatenate([out_acc, k_curr, v, pad], axis=-1)


def multi_scale_gau_retention(x, params, rel_pos):
    """Parallel forward (dense=False). Returns (out, None, k_curr, v_curr)."""
    (sin, cos), mask = rel_pos            # sin/cos: (T, KEY_DIM); mask: (nh, T, T)
    B, T, H = x.shape
    bt = B * T

    # Fold batch into sublane rows -> one kernel invocation, no grid.
    x2d = x.reshape(bt, H)

    # sin/cos tiled across lanes [q-h0 | q-h1 | k-h0 | k-h1] and across batch rows.
    sin_l = jnp.tile(sin, (B, 2 * NUM_HEADS))     # (B*T, 2*QK_DIM) = (16, 32)
    cos_l = jnp.tile(cos, (B, 2 * NUM_HEADS))

    # Per-head decay mask made block-diagonal over batch.
    eye_b = jnp.eye(B, dtype=mask.dtype)
    mask_bd = jnp.stack([jnp.kron(eye_b, mask[h]) for h in range(NUM_HEADS)])

    slab = pl.pallas_call(
        _fused_kernel,
        out_shape=jax.ShapeDtypeStruct((bt, SLAB), jnp.float32),
    )(x2d, params["w_all_t"], params["wo_t"], params["rot"],
      cos_l, sin_l, mask_bd, params["gn_w"])

    out = slab[:, :H].reshape(B, T, H)
    k_curr = slab[:, H:H + QK_DIM].reshape(B, T, QK_DIM)
    v_curr = slab[:, H + QK_DIM:H + QK_DIM + EXPANSION].reshape(B, T, EXPANSION)
    return out, None, k_curr, v_curr


# ---------------------------------------------------------------------------
# helpers + pure-JAX reference
# ---------------------------------------------------------------------------
def _rotate_matrix(d):
    """R such that x @ R == rotate_every_two(x) for even d."""
    m = np.zeros((d, d), np.float32)
    for j in range(0, d, 2):
        m[j + 1, j] = -1.0
        m[j, j + 1] = 1.0
    return jnp.asarray(m)


def _rotate_every_two_ref(t):
    x1 = t[..., 0::2]
    x2 = t[..., 1::2]
    return jnp.stack((-x2, x1), axis=-1).reshape(t.shape)


def _ref_forward(x, params, rel_pos):
    (sin, cos), mask = rel_pos
    B, T, _ = x.shape
    q = jax.nn.silu(x @ params["wq_t"])
    k = jax.nn.silu(x @ params["wk_t"]) * SCALING
    v = jax.nn.silu(x @ params["wv_t"])
    gate = jax.nn.silu(x @ params["wg_t"])
    k_curr = k
    v_curr = v
    qh = q.reshape(B, T, NUM_HEADS, KEY_DIM).transpose(0, 2, 1, 3)
    kh = k.reshape(B, T, NUM_HEADS, KEY_DIM).transpose(0, 2, 1, 3)
    vh = v.reshape(B, T, NUM_HEADS, HEAD_DIM).transpose(0, 2, 1, 3)
    qr = qh * cos + _rotate_every_two_ref(qh) * sin
    kr = kh * cos + _rotate_every_two_ref(kh) * sin
    qk = jnp.einsum("bhid,bhjd->bhij", qr, kr)
    qk = qk * mask[None]
    denom = jnp.clip(jnp.sum(jnp.abs(qk), -1, keepdims=True), 1.0, 50000.0)
    qk = qk / denom
    o = jnp.einsum("bhij,bhjd->bhid", qk, vh).transpose(0, 2, 1, 3)  # (B,T,nh,hd)
    var = jnp.mean(o * o, -1, keepdims=True)
    o = o * jax.lax.rsqrt(var + RMS_EPS) * params["gn_w"][0]
    o = o.reshape(B, T, EXPANSION) * gate
    return o @ params["wo_t"], k_curr, v_curr


if __name__ == "__main__":
    key = jax.random.PRNGKey(0)
    kx, kq, kk, kh, ko = jax.random.split(key, 5)

    x = jax.random.normal(kx, (BATCH, SEQ, HIDDEN), jnp.float32)

    def xavier(k, out_f, in_f, gain):
        a = gain * math.sqrt(6.0 / (in_f + out_f))
        return jax.random.uniform(k, (out_f, in_f), jnp.float32, -a, a)

    # PyTorch-convention weights (out, in), then transposed for x @ W.
    wq = xavier(kq, QK_DIM, HIDDEN, 2 ** (-2.5))
    wk = xavier(kk, QK_DIM, HIDDEN, 2 ** (-2.5))
    wh = xavier(kh, 2 * EXPANSION, HIDDEN, 2 ** (-2.5))   # to_hidden
    wo = xavier(ko, HIDDEN, EXPANSION, 2 ** (-1))         # to_out

    wq_t = wq.T
    wk_t = wk.T
    wv_t = wh[:EXPANSION].T       # first chunk of to_hidden -> v
    wg_t = wh[EXPANSION:].T       # second chunk -> gate
    wo_t = wo.T

    params = dict(
        # fused-kernel weights, lane-tile aligned order [v | gate | q | k]
        w_all_t=jnp.concatenate([wv_t, wg_t, wq_t, wk_t], axis=1),  # (H, 160)
        wo_t=wo_t,
        gn_w=jnp.ones((1, HEAD_DIM), jnp.float32),   # group_norm weight (ones)
        rot=_rotate_matrix(2 * QK_DIM),              # 32x32 for fused [q|k]
        # individual weights (reference only)
        wq_t=wq_t, wk_t=wk_t, wv_t=wv_t, wg_t=wg_t,
    )

    # rel_pos: (sin, cos) of shape (T, key_dim) and per-head decay mask (nh, T, T)
    pos = jnp.arange(SEQ, dtype=jnp.float32)
    inv_freq = 1.0 / (10000.0 ** (jnp.arange(0, KEY_DIM, 2, dtype=jnp.float32)
                                  / KEY_DIM))
    angle = jnp.repeat(inv_freq, 2)
    theta = pos[:, None] * angle[None, :]
    sin, cos = jnp.sin(theta), jnp.cos(theta)

    gamma = 1.0 - 2.0 ** (-5.0 - jnp.arange(NUM_HEADS, dtype=jnp.float32))
    idx = jnp.arange(SEQ)
    diff = (idx[:, None] - idx[None, :]).astype(jnp.float32)
    decay = jnp.where(diff >= 0, gamma[:, None, None] ** diff[None], 0.0)
    mask = decay / jnp.sqrt(jnp.sum(decay, axis=-1, keepdims=True))

    rel_pos = ((sin, cos), mask)

    out, _, k_curr, v_curr = multi_scale_gau_retention(x, params, rel_pos)
    out = jax.block_until_ready(out)

    ref_out, ref_k, ref_v = _ref_forward(x, params, rel_pos)
    assert out.shape == (BATCH, SEQ, HIDDEN)
    assert k_curr.shape == (BATCH, SEQ, QK_DIM)
    assert v_curr.shape == (BATCH, SEQ, EXPANSION)
    assert jnp.allclose(out, ref_out, atol=1e-3, rtol=1e-2), \
        "output mismatch vs pure-JAX reference"
    assert jnp.allclose(k_curr, ref_k, atol=1e-3, rtol=1e-2), \
        "k_curr mismatch vs pure-JAX reference"
    assert jnp.allclose(v_curr, ref_v, atol=1e-3, rtol=1e-2), \
        "v_curr mismatch vs pure-JAX reference"

    print("KERNEL_OK")
</pallas_src>

<mosaic_0001>
module attributes {stable_mosaic.version = 11 : i64} {
  func.func @_fused_kernel(%arg0: memref<16x32xf32, #tpu.memory_space<vmem>>, %arg1: memref<32x160xf32, #tpu.memory_space<vmem>>, %arg2: memref<64x32xf32, #tpu.memory_space<vmem>>, %arg3: memref<32x32xf32, #tpu.memory_space<vmem>>, %arg4: memref<16x32xf32, #tpu.memory_space<vmem>>, %arg5: memref<16x32xf32, #tpu.memory_space<vmem>>, %arg6: memref<2x16x16xf32, #tpu.memory_space<vmem>>, %arg7: memref<1x32xf32, #tpu.memory_space<vmem>>, %arg8: memref<16x128xf32, #tpu.memory_space<vmem>>) attributes {dimension_semantics = [], scalar_prefetch = 0 : i64, scratch_operands = 0 : i64, tpu.core_type = #tpu.core_type<tc>} {
    %c0 = arith.constant 0 : index
    %c0_0 = arith.constant 0 : index
    %0 = vector.load %arg0[%c0, %c0_0] : memref<16x32xf32, #tpu.memory_space<vmem>>, vector<16x32xf32>
    %c0_1 = arith.constant 0 : index
    %c0_2 = arith.constant 0 : index
    %1 = vector.load %arg1[%c0_1, %c0_2] : memref<32x160xf32, #tpu.memory_space<vmem>>, vector<32x160xf32>
    %cst = arith.constant dense<0.000000e+00> : vector<16x160xf32>
    %2 = tpu.matmul %0, %1, %cst {dimension_numbers = #tpu.dot_dimension_numbers<[1], [0], [0], [1], [0, 0, 1, 1], [], []>} : vector<16x32xf32>, vector<32x160xf32>, vector<16x160xf32> -> vector<16x160xf32>
    %3 = arith.negf %2 : vector<16x160xf32>
    %4 = math.exp %3 : vector<16x160xf32>
    %cst_3 = arith.constant 1.000000e+00 : f32
    %5 = vector.broadcast %cst_3 : f32 to vector<16x160xf32>
    %6 = arith.addf %5, %4 : vector<16x160xf32>
    %7 = arith.divf %5, %6 : vector<16x160xf32>
    %8 = arith.mulf %2, %7 : vector<16x160xf32>
    %9 = vector.extract_strided_slice %8 {offsets = [0, 0], sizes = [16, 64], strides = [1, 1]} : vector<16x160xf32> to vector<16x64xf32>
    %10 = vector.extract_strided_slice %8 {offsets = [0, 64], sizes = [16, 64], strides = [1, 1]} : vector<16x160xf32> to vector<16x64xf32>
    %11 = vector.extract_strided_slice %8 {offsets = [0, 128], sizes = [16, 32], strides = [1, 1]} : vector<16x160xf32> to vector<16x32xf32>
    %c0_4 = arith.constant 0 : index
    %c0_5 = arith.constant 0 : index
    %12 = vector.load %arg3[%c0_4, %c0_5] : memref<32x32xf32, #tpu.memory_space<vmem>>, vector<32x32xf32>
    %cst_6 = arith.constant dense<0.000000e+00> : vector<16x32xf32>
    %13 = tpu.matmul %11, %12, %cst_6 {dimension_numbers = #tpu.dot_dimension_numbers<[1], [0], [0], [1], [0, 0, 1, 1], [], []>} : vector<16x32xf32>, vector<32x32xf32>, vector<16x32xf32> -> vector<16x32xf32>
    %c0_7 = arith.constant 0 : index
    %c0_8 = arith.constant 0 : index
    %14 = vector.load %arg4[%c0_7, %c0_8] : memref<16x32xf32, #tpu.memory_space<vmem>>, vector<16x32xf32>
    %15 = arith.mulf %11, %14 : vector<16x32xf32>
    %c0_9 = arith.constant 0 : index
    %c0_10 = arith.constant 0 : index
    %16 = vector.load %arg5[%c0_9, %c0_10] : memref<16x32xf32, #tpu.memory_space<vmem>>, vector<16x32xf32>
    %17 = arith.mulf %13, %16 : vector<16x32xf32>
    %18 = arith.addf %15, %17 : vector<16x32xf32>
    %19 = vector.extract_strided_slice %18 {offsets = [0, 0], sizes = [16, 16], strides = [1, 1]} : vector<16x32xf32> to vector<16x16xf32>
    %20 = vector.extract_strided_slice %18 {offsets = [0, 16], sizes = [16, 16], strides = [1, 1]} : vector<16x32xf32> to vector<16x16xf32>
    %cst_11 = arith.constant 0.353553385 : f32
    %21 = vector.broadcast %cst_11 : f32 to vector<16x16xf32>
    %22 = arith.mulf %20, %21 : vector<16x16xf32>
    %23 = vector.extract_strided_slice %11 {offsets = [0, 16], sizes = [16, 16], strides = [1, 1]} : vector<16x32xf32> to vector<16x16xf32>
    %cst_12 = arith.constant 0.353553385 : f32
    %24 = vector.broadcast %cst_12 : f32 to vector<16x16xf32>
    %25 = arith.mulf %23, %24 : vector<16x16xf32>
    %c0_13 = arith.constant 0 : index
    %c0_14 = arith.constant 0 : index
    %c0_15 = arith.constant 0 : index
    %26 = vector.load %arg6[%c0_13, %c0_14, %c0_15] : memref<2x16x16xf32, #tpu.memory_space<vmem>>, vector<2x16x16xf32>
    %c0_16 = arith.constant 0 : index
    %c0_17 = arith.constant 0 : index
    %27 = vector.load %arg7[%c0_16, %c0_17] : memref<1x32xf32, #tpu.memory_space<vmem>>, vector<1x32xf32>
    %c0_18 = arith.constant 0 : index
    %c0_19 = arith.constant 0 : index
    %28 = vector.load %arg2[%c0_18, %c0_19] : memref<64x32xf32, #tpu.memory_space<vmem>>, vector<64x32xf32>
    %cst_20 = arith.constant 0.000000e+00 : f32
    %29 = vector.broadcast %cst_20 : f32 to vector<16x32xf32>
    %30 = vector.extract_strided_slice %19 {offsets = [0, 0], sizes = [16, 8], strides = [1, 1]} : vector<16x16xf32> to vector<16x8xf32>
    %31 = vector.extract_strided_slice %22 {offsets = [0, 0], sizes = [16, 8], strides = [1, 1]} : vector<16x16xf32> to vector<16x8xf32>
    %32 = vector.extract_strided_slice %9 {offsets = [0, 0], sizes = [16, 32], strides = [1, 1]} : vector<16x64xf32> to vector<16x32xf32>
    %cst_21 = arith.constant dense<0.000000e+00> : vector<16x16xf32>
    %33 = tpu.matmul %30, %31, %cst_21 {dimension_numbers = #tpu.dot_dimension_numbers<[1], [1], [0], [0], [0, 0, 1, 0], [], []>} : vector<16x8xf32>, vector<16x8xf32>, vector<16x16xf32> -> vector<16x16xf32>
    %34 = vector.extract_strided_slice %26 {offsets = [0, 0, 0], sizes = [1, 16, 16], strides = [1, 1, 1]} : vector<2x16x16xf32> to vector<1x16x16xf32>
    %35 = vector.shape_cast %34 : vector<1x16x16xf32> to vector<16x16xf32>
    %36 = arith.mulf %33, %35 : vector<16x16xf32>
    %37 = math.absf %36 : vector<16x16xf32>
    %cst_22 = arith.constant dense<0.000000e+00> : vector<16xf32>
    %38 = vector.multi_reduction <add>, %37, %cst_22 [1] : vector<16x16xf32> to vector<16xf32>
    %39 = vector.shape_cast %38 : vector<16xf32> to vector<16x1xf32>
    %cst_23 = arith.constant 1.000000e+00 : f32
    %cst_24 = arith.constant 5.000000e+04 : f32
    %40 = vector.broadcast %cst_23 : f32 to vector<16x1xf32>
    %41 = arith.maximumf %40, %39 : vector<16x1xf32>
    %42 = vector.broadcast %cst_24 : f32 to vector<16x1xf32>
    %43 = arith.minimumf %42, %41 : vector<16x1xf32>
    %44 = vector.broadcast %43 : vector<16x1xf32> to vector<16x16xf32>
    %45 = arith.divf %36, %44 : vector<16x16xf32>
    %cst_25 = arith.constant dense<0.000000e+00> : vector<16x32xf32>
    %46 = tpu.matmul %45, %32, %cst_25 {dimension_numbers = #tpu.dot_dimension_numbers<[1], [0], [0], [1], [0, 0, 1, 1], [], []>} : vector<16x16xf32>, vector<16x32xf32>, vector<16x32xf32> -> vector<16x32xf32>
    %47 = arith.mulf %46, %46 : vector<16x32xf32>
    %cst_26 = arith.constant dense<0.000000e+00> : vector<16xf32>
    %48 = vector.multi_reduction <add>, %47, %cst_26 [1] : vector<16x32xf32> to vector<16xf32>
    %49 = vector.shape_cast %48 : vector<16xf32> to vector<16x1xf32>
    %cst_27 = arith.constant 3.200000e+01 : f32
    %50 = vector.broadcast %cst_27 : f32 to vector<16x1xf32>
    %51 = arith.divf %49, %50 : vector<16x1xf32>
    %cst_28 = arith.constant 9.99999997E-7 : f32
    %52 = vector.broadcast %cst_28 : f32 to vector<16x1xf32>
    %53 = arith.addf %51, %52 : vector<16x1xf32>
    %54 = math.rsqrt %53 : vector<16x1xf32>
    %55 = vector.broadcast %54 : vector<16x1xf32> to vector<16x32xf32>
    %56 = arith.mulf %46, %55 : vector<16x32xf32>
    %57 = vector.broadcast %27 : vector<1x32xf32> to vector<16x32xf32>
    %58 = arith.mulf %56, %57 : vector<16x32xf32>
    %59 = vector.extract_strided_slice %10 {offsets = [0, 0], sizes = [16, 32], strides = [1, 1]} : vector<16x64xf32> to vector<16x32xf32>
    %60 = arith.mulf %58, %59 : vector<16x32xf32>
    %61 = vector.extract_strided_slice %28 {offsets = [0, 0], sizes = [32, 32], strides = [1, 1]} : vector<64x32xf32> to vector<32x32xf32>
    %cst_29 = arith.constant dense<0.000000e+00> : vector<16x32xf32>
    %62 = tpu.matmul %60, %61, %cst_29 {dimension_numbers = #tpu.dot_dimension_numbers<[1], [0], [0], [1], [0, 0, 1, 1], [], []>} : vector<16x32xf32>, vector<32x32xf32>, vector<16x32xf32> -> vector<16x32xf32>
    %63 = arith.addf %29, %62 : vector<16x32xf32>
    %64 = vector.extract_strided_slice %19 {offsets = [0, 8], sizes = [16, 8], strides = [1, 1]} : vector<16x16xf32> to vector<16x8xf32>
    %65 = vector.extract_strided_slice %22 {offsets = [0, 8], sizes = [16, 8], strides = [1, 1]} : vector<16x16xf32> to vector<16x8xf32>
    %66 = vector.extract_strided_slice %9 {offsets = [0, 32], sizes = [16, 32], strides = [1, 1]} : vector<16x64xf32> to vector<16x32xf32>
    %cst_30 = arith.constant dense<0.000000e+00> : vector<16x16xf32>
    %67 = tpu.matmul %64, %65, %cst_30 {dimension_numbers = #tpu.dot_dimension_numbers<[1], [1], [0], [0], [0, 0, 1, 0], [], []>} : vector<16x8xf32>, vector<16x8xf32>, vector<16x16xf32> -> vector<16x16xf32>
    %68 = vector.extract_strided_slice %26 {offsets = [1, 0, 0], sizes = [1, 16, 16], strides = [1, 1, 1]} : vector<2x16x16xf32> to vector<1x16x16xf32>
    %69 = vector.shape_cast %68 : vector<1x16x16xf32> to vector<16x16xf32>
    %70 = arith.mulf %67, %69 : vector<16x16xf32>
    %71 = math.absf %70 : vector<16x16xf32>
    %cst_31 = arith.constant dense<0.000000e+00> : vector<16xf32>
    %72 = vector.multi_reduction <add>, %71, %cst_31 [1] : vector<16x16xf32> to vector<16xf32>
    %73 = vector.shape_cast %72 : vector<16xf32> to vector<16x1xf32>
    %cst_32 = arith.constant 1.000000e+00 : f32
    %cst_33 = arith.constant 5.000000e+04 : f32
    %74 = vector.broadcast %cst_32 : f32 to vector<16x1xf32>
    %75 = arith.maximumf %74, %73 : vector<16x1xf32>
    %76 = vector.broadcast %cst_33 : f32 to vector<16x1xf32>
    %77 = arith.minimumf %76, %75 : vector<16x1xf32>
    %78 = vector.broadcast %77 : vector<16x1xf32> to vector<16x16xf32>
    %79 = arith.divf %70, %78 : vector<16x16xf32>
    %cst_34 = arith.constant dense<0.000000e+00> : vector<16x32xf32>
    %80 = tpu.matmul %79, %66, %cst_34 {dimension_numbers = #tpu.dot_dimension_numbers<[1], [0], [0], [1], [0, 0, 1, 1], [], []>} : vector<16x16xf32>, vector<16x32xf32>, vector<16x32xf32> -> vector<16x32xf32>
    %81 = arith.mulf %80, %80 : vector<16x32xf32>
    %cst_35 = arith.constant dense<0.000000e+00> : vector<16xf32>
    %82 = vector.multi_reduction <add>, %81, %cst_35 [1] : vector<16x32xf32> to vector<16xf32>
    %83 = vector.shape_cast %82 : vector<16xf32> to vector<16x1xf32>
    %cst_36 = arith.constant 3.200000e+01 : f32
    %84 = vector.broadcast %cst_36 : f32 to vector<16x1xf32>
    %85 = arith.divf %83, %84 : vector<16x1xf32>
    %cst_37 = arith.constant 9.99999997E-7 : f32
    %86 = vector.broadcast %cst_37 : f32 to vector<16x1xf32>
    %87 = arith.addf %85, %86 : vector<16x1xf32>
    %88 = math.rsqrt %87 : vector<16x1xf32>
    %89 = vector.broadcast %88 : vector<16x1xf32> to vector<16x32xf32>
    %90 = arith.mulf %80, %89 : vector<16x32xf32>
    %91 = vector.broadcast %27 : vector<1x32xf32> to vector<16x32xf32>
    %92 = arith.mulf %90, %91 : vector<16x32xf32>
    %93 = vector.extract_strided_slice %10 {offsets = [0, 32], sizes = [16, 32], strides = [1, 1]} : vector<16x64xf32> to vector<16x32xf32>
    %94 = arith.mulf %92, %93 : vector<16x32xf32>
    %95 = vector.extract_strided_slice %28 {offsets = [32, 0], sizes = [32, 32], strides = [1, 1]} : vector<64x32xf32> to vector<32x32xf32>
    %cst_38 = arith.constant dense<0.000000e+00> : vector<16x32xf32>
    %96 = tpu.matmul %94, %95, %cst_38 {dimension_numbers = #tpu.dot_dimension_numbers<[1], [0], [0], [1], [0, 0, 1, 1], [], []>} : vector<16x32xf32>, vector<32x32xf32>, vector<16x32xf32> -> vector<16x32xf32>
    %97 = arith.addf %63, %96 : vector<16x32xf32>
    %cst_39 = arith.constant 0.000000e+00 : f32
    %98 = vector.broadcast %cst_39 : f32 to vector<16x16xf32>
    %99 = tpu.concatenate %97, %25, %9, %98 in 1 : vector<16x32xf32>, vector<16x16xf32>, vector<16x64xf32>, vector<16x16xf32> -> vector<16x128xf32>
    %c0_40 = arith.constant 0 : index
    %c0_41 = arith.constant 0 : index
    %100 = vector.load %arg8[%c0_40, %c0_41] : memref<16x128xf32, #tpu.memory_space<vmem>>, vector<16x128xf32>
    tpu.vector_store %arg8[%c0_40, %c0_41], %99 {strides = array<i32>} : memref<16x128xf32, #tpu.memory_space<vmem>>, vector<16x128xf32>,
    return
  }
}

</mosaic_0001>

<bundles_post_ra>
// kernel: tpu_custom_call.1
= control target key start
LH: loop header
LB: loop body
LE: loop exit
PB: predicated region body
PF: predicated region fallthrough
CT: control target
= control target key end

     0   :  { %13 = vsyncpa [#allocation3], 0  ;;  %s1558_s0 = inlined_call_operand.hbm [shape: f32[16,32], index: 0, kind: input, shape index: {}]   ;;  %s1559_s1 = inlined_call_operand.vmem [shape: f32[32,160], index: 1, kind: input, shape index: {}]   ;;  %s1560_s2 = inlined_call_operand.vmem [shape: f32[64,32], index: 2, kind: input, shape index: {}]   ;;  %s1561_s3 = inlined_call_operand.vmem [shape: f32[32,32], index: 3, kind: input, shape index: {}]   ;;  %s1562_s4 = inlined_call_operand.hbm [shape: f32[16,32], index: 4, kind: input, shape index: {}]   ;;  %s1563_s5 = inlined_call_operand.vmem [shape: f32[16,32], index: 5, kind: input, shape index: {}]   ;;  %s1564_s6 = inlined_call_operand.hbm [shape: f32[2,16,16], index: 6, kind: input, shape index: {}]   ;;  %s1565_s7 = inlined_call_operand.vmem [shape: f32[1,32], index: 7, kind: input, shape index: {}]   ;;  %s1566_s8 = inlined_call_operand.hbm [shape: f32[16,128], index: 8, kind: output, shape index: {}]  }
   0x1   :  { %14 = vsyncpa [#allocation6], 0 }
   0x2   :  { %15 = vsyncpa [#allocation4], 0  ;;  %s1288_s27 = smov [#allocation5]   ;;  %s1289_s29 = smov [#allocation2]  }
   0x3   :  { %s39_s28 = sshll.u32 %s1288_s27, 4  ;;  %s21_s30 = sshll.u32 %s1289_s29, 4  ;;  %s40_s28 = int_to_ptr.vmem [resolvable:$true] %s39_s28  ;;  %s1348_s30 = int_to_ptr.vmem [resolvable:$true] %s21_s30 }
   0x4   :  { %s1194_s11 = scalar_lea.hbm %s1562_s4, 256 }
   0x5   :  { %p1195_p0 = scmp.ne.s32.totalorder %s1562_s4, %s1194_s11  ;;  %p1198_p1 = scmp.lt.u32.totalorder %s1194_s11, %s1562_s4 }
   0x7   :  { %p1200_p2 = pnand %p1198_p1, %p1195_p0 }
   0x9   :  { %1203 = shalt.err (!%p1200_p2)
}
   0xa   :  { %s1204_s16 = scalar_lea.vmem %s40_s28, 256  ;;  %p1209_p4 = scmp.lt.s32.totalorder %s40_s28, %s40_s28 }
   0xb   :  { %p1205_p3 = scmp.ne.s32.totalorder %s40_s28, %s1204_s16  ;;  %p1210_p5 = scmp.lt.s32.totalorder %s1204_s16, %s1204_s16 }
   0xd   :  { %p1211_p6 = por %p1210_p5, %p1209_p4 }
   0xf   :  { %p1212_p7 = pnand %p1211_p6, %p1205_p3 }
  0x11   :  { %1215 = shalt.err (!%p1212_p7)
}
  0x12   :  { %s1290_s17 = smov 128   ;;  %s1291_s18 = smov 8  }
  0x13   :  { %45 = dma.hbm_to_vmem [thread:$0]  %s1562_s4, 256, %s40_s28, [#allocation6], %s1290_s17, %s1290_s17, %s1291_s18  }
  0x14   :  { %s1216_s23 = scalar_lea.hbm %s1558_s0, 256 }
  0x15   :  { %p1217_p8 = scmp.ne.s32.totalorder %s1558_s0, %s1216_s23  ;;  %p1220_p9 = scmp.lt.u32.totalorder %s1216_s23, %s1558_s0 }
  0x17   :  { %p1222_p10 = pnand %p1220_p9, %p1217_p8 }
  0x19   :  { %1225 = shalt.err (!%p1222_p10)
}
  0x1a   :  { %s1226_s29 = scalar_lea.vmem %s1348_s30, 256  ;;  %p1231_p12 = scmp.lt.s32.totalorder %s1348_s30, %s1348_s30 }
  0x1b   :  { %p1227_p11 = scmp.ne.s32.totalorder %s1348_s30, %s1226_s29  ;;  %p1232_p13 = scmp.lt.s32.totalorder %s1226_s29, %s1226_s29 }
  0x1d   :  { %p1233_p0 = por %p1232_p13, %p1231_p12 }
  0x1f   :  { %p1234_p1 = pnand %p1233_p0, %p1227_p11 }
  0x21   :  { %1237 = shalt.err (!%p1234_p1)
}
  0x22   :  { %27 = dma.hbm_to_vmem [thread:$0]  %s1558_s0, 256, %s1348_s30, [#allocation3], %s1290_s17, %s1290_s17, %s1291_s18  }
  0x23   :  { %s1292_s9 = smov [#allocation7]   ;;  %s1238_s13 = scalar_lea.hbm %s1564_s6, 512 }
  0x24   :  { %s53_s10 = sshll.u32 %s1292_s9, 4  ;;  %p1239_p2 = scmp.ne.s32.totalorder %s1564_s6, %s1238_s13  ;;  %s54_s10 = int_to_ptr.vmem [resolvable:$true] %s53_s10 }
  0x25   :  { %p1242_p3 = scmp.lt.u32.totalorder %s1238_s13, %s1564_s6 }
  0x27   :  { %p1244_p4 = pnand %p1242_p3, %p1239_p2 }
  0x29   :  { %1247 = shalt.err (!%p1244_p4)
}
  0x2a   :  { %s1248_s20 = scalar_lea.vmem %s54_s10, 512  ;;  %p1253_p6 = scmp.lt.s32.totalorder %s54_s10, %s54_s10 }
  0x2b   :  { %p1249_p5 = scmp.ne.s32.totalorder %s54_s10, %s1248_s20  ;;  %p1254_p7 = scmp.lt.s32.totalorder %s1248_s20, %s1248_s20 }
  0x2d   :  { %p1255_p8 = por %p1254_p7, %p1253_p6 }
  0x2f   :  { %p1256_p9 = pnand %p1255_p8, %p1249_p5 }
  0x31   :  { %1259 = shalt.err (!%p1256_p9)
}
  0x32   :  { %59 = dma.hbm_to_vmem [thread:$0]  %s1564_s6, 512, %s54_s10, [#allocation6], %s1290_s17, %s1290_s17, %s1291_s18  }
  0x33   :  { %1282 = dma.done.wait [#allocation3], 256  }
  0x34   :  { %1283 = vsyncadd [#allocation3], 4294967040 }
  0x35   :  { %1284 = dma.done.wait [#allocation6], 768  }
  0x36   :  { %1285 = vsyncadd [#allocation6], 4294966528  ;;  %v1293_v0 = vmov 0.0   ;;  %v74_v1 = vld [vmem:[%s1559_s1 + $0x8] sm:$0xff]  ;;  %v76_v2 = vld [vmem:[%s1559_s1 + $0x18] sm:$0xff]  ;;  %vm81_vm0 = vcmask 261120  }
  0x37   :  { %152 = vmatprep.mubr.f32.mxu1 %v1293_v0  ;;  %v73_v3 = vld [vmem:[%s1559_s1] sm:$0xff]  ;;  %v1078_v4 = vpack.c.bf16 %v76_v2, %v74_v1  ;;  %v75_v5 = vld [vmem:[%s1559_s1 + $0x10] sm:$0xff]  ;;  %v78_v6 = vld [vmem:[%s1559_s1 + $0x28] sm:$0xff]  ;;  %vm311_vm1 = vcmask 64512   ;;  %s1294_s24 = smov 112   ;;  %vm401_vm3 = vcmask 130048  }
  0x38   :  { %v80_v7 = vld [vmem:[%s1559_s1 + $0x38] sm:$0xff]  ;;  %v1080_v8 = vpack.c.bf16 %v75_v5, %v73_v3  ;;  %v77_v10 = vld [vmem:[%s1559_s1 + $0x20] sm:$0xff]  ;;  %v79_v11 = vld [vmem:[%s1559_s1 + $0x30] sm:$0xff]  ;;  %s1296_s25 = smov 120   ;;  %s1297_s26 = smov 96   ;;  %vm932_vm4 = vcmask 392192  }
  0x39   :  { %v1082_v9 = vpack.c.bf16 %v80_v7, %v78_v6  ;;  %1079 = vmatprep.subr.bf16.mxu1 %v1078_v4  ;;  %v1084_v12 = vpack.c.bf16 %v79_v11, %v77_v10  ;;  %v71_v13 = vld [vmem:[#allocation2] sm:$0xff]  ;;  %v72_v14 = vld [vmem:[#allocation2 + $0x8] sm:$0xff]  ;;  %v195_v18 = vld [vmem:[%s1561_s3 + $0x10] sm:$0xff]  ;;  %s1298_s6 = smov 32   ;;  %s1299_s9 = smov 48   ;;  %vm935_vm5 = vcmask 916480  }
  0x3a   :  { %1081 = vmatpush1.bf16.msra.mxu1 %v1080_v8  ;;  %v193_v15 = vld [vmem:[%s1561_s3] sm:$0xff]  ;;  %v194_v16 = vld [vmem:[%s1561_s3 + $0x8] sm:$0xff]  ;;  %v196_v19 = vld [vmem:[%s1561_s3 + $0x18] sm:$0xff]  ;;  %s1300_s10 = smov 64   ;;  %s1301_s20 = smov 16  }
  0x3b   :  { %1083 = vmatprep.subr.bf16.mxu1 %v1082_v9  ;;  %v1086_v17 = vpack.c.bf16 %v194_v16, %v193_v15  ;;  %v1090_v20 = vpack.c.bf16 %v196_v19, %v195_v18  ;;  %v279_v46 = vld [vmem:[#allocation5 + $0x8] sm:$0xff]  ;;  %v283_v47 = vld [vmem:[%s1563_s5 + $0x8] sm:$0xff]  ;;  %v278_v48 = vld [vmem:[#allocation5] sm:$0xff] }
  0x3c   :  { %v282_v49 = vld [vmem:[%s1563_s5] sm:$0xff]  ;;  %vm1463_vm2 = vmpackc.low %vm311_vm1, %vm311_vm1  ;;  %v293_v2 = vld [vmem:[#allocation7 + $0x8] sm:$0xff]  ;;  %s1295_s5 = smov 104  }
  0x3d   :  { %v292_v3 = vld [vmem:[#allocation7] sm:$0xff] }
  0x3e   :  { %1085 = vmatpush1.bf16.msra.mxu1 %v1084_v12 }
  0x3f   :  { %1087 = vmatprep.subr.bf16.mxu1 %v1086_v17 }
  0x41   :  { %958 = vmatmul.mubr.msk.f32.vlgmr.msra.gmra.mrb[0].mxu1 %vm81_vm0, %v71_v13 }
  0x42   :  { %158 = vmatprep.mubr.f32.mxu1 %v1293_v0  ;;  %1089 = vmatpush3.bf16.msra.mxu1 %v1086_v17 }
  0x43   :  { %1091 = vmatprep.subr.bf16.mxu1 %v1090_v20 }
  0x45   :  { %959 = vmatmul.mubr.msk.f32.gmra.mrb[2].mxu1 %vm81_vm0, %v72_v14 }
  0x46   :  { %1093 = vmatpush3.bf16.msra.mxu1 %v1090_v20 }
 0x114   :  { %v154_v21 = vpop.f32.mrb[0].mxu1 }
 0x115   :  { %v960_v22 = vmul.f32 -1.442695, %v154_v21  ;;  %v156_v23 = vpop.f32.mrb[1].mxu1 }
 0x116   :  { %v961_v24 = vmul.f32 -1.442695, %v156_v23 }
 0x117   :  { %1162 = vpow2.f32 %v960_v22 }
 0x118   :  { %1164 = vpow2.f32 %v961_v24  ;;  %v160_v25 = vpop.f32.mrb[2].mxu1 }
 0x119   :  { %v962_v26 = vmul.f32 -1.442695, %v160_v25  ;;  %v162_v27 = vpop.f32.mrb[3].mxu1 }
 0x11a   :  { %v963_v28 = vmul.f32 -1.442695, %v162_v27 }
 0x11b   :  { %1166 = vpow2.f32 %v962_v26 }
 0x11c   :  { %1168 = vpow2.f32 %v963_v28 }
 0x121   :  { %v1163_v29 = vpop.eup %1162 }
 0x122   :  { %v1165_v30 = vpop.eup %1164  ;;  %v177_v31 = vadd.f32 1.0, %v1163_v29 }
 0x123   :  { %v178_v32 = vadd.f32 1.0, %v1165_v30  ;;  %v295_v30 = vld [vmem:[#allocation7 + $0x18] sm:$0xff] }
 0x125   :  { %v1167_v33 = vpop.eup %1166  ;;  %1170 = vrcp.f32 %v178_v32 }
 0x126   :  { %v1169_v34 = vpop.eup %1168  ;;  %1172 = vrcp.f32 %v177_v31  ;;  %v179_v35 = vadd.f32 1.0, %v1167_v33  ;;  %v294_v31 = vld [vmem:[#allocation7 + $0x10] sm:$0xff] }
 0x127   :  { %v180_v36 = vadd.f32 1.0, %v1169_v34 }
 0x128   :  { %1174 = vrcp.f32 %v179_v35 }
 0x129   :  { %1176 = vrcp.f32 %v180_v36 }
 0x12f   :  { %v1171_v37 = vpop.eup %1170 }
 0x130   :  { %v1173_v38 = vpop.eup %1172  ;;  %v1438_v39 = vmul.f32 %v1171_v37, %v156_v23 }
 0x131   :  { %v1442_v42 = vmul.f32 %v1173_v38, %v154_v21 }
 0x132   :  { %v1175_v40 = vpop.eup %1174  ;;  %1025 = vmatprep.mubr.msk.f32.mxu1 %vm81_vm0, %v1438_v39  ;;  %v280_v54 = vmul.f32 %v278_v48, %v1438_v39 }
 0x133   :  { %v1177_v41 = vpop.eup %1176  ;;  %v1444_v43 = vmul.f32 %v1175_v40, %v160_v25 }
 0x134   :  { %v1446_v44 = vmul.f32 %v1177_v41, %v162_v27 }
 0x135   :  { %v1100_v45 = vpack.c.bf16 %v1444_v43, %v1442_v42  ;;  %v1157_v41 = vpack.i.bf16 %v1444_v43, %v1442_v42 }
 0x136   :  { %1026 = vmatmul.mubr.msk.f32.vlgmr.msra.gmra.mrb[4].mxu1 %vm81_vm0, %v1446_v44  ;;  %v281_v51 = vmul.f32 %v279_v46, %v1446_v44 }
 0x137   :  { %1101 = vmatprep.subr.bf16.mxu1 %v1100_v45 }
 0x138   :  { %1103 = vmatpush3.bf16.msra.mxu1 %v1100_v45 }
 0x209   :  { %v1027_v50 = vpop.f32.mrb[4].mxu1 }
 0x20a   :  { %v285_v52 = vmul.f32 %v1027_v50, %v283_v47  ;;  %v269_v53 = vpop.f32.mrb[5].mxu1 }
 0x20b   :  { %v284_v55 = vmul.f32 %v282_v49, %v269_v53 }
 0x20c   :  { %v287_v56 = vadd.f32 %v285_v52, %v281_v51 }
 0x20d   :  { %v286_v57 = vadd.f32 %v284_v55, %v280_v54 }
 0x20e   :  { %v289_v58 = vmul.f32 0.35355338, %v287_v56 }
 0x20f   :  { %1032 = vmatprep.mubr.msk.f32.mxu0 %vm311_vm1, %v286_v57  ;;  %v288_v59 = vmul.f32 0.35355338, %v286_v57 }
 0x211   :  { %v1147_v60 = vpack.i.bf16 %v289_v58, %v288_v59 }
 0x213   :  { %1148 = vrot.lane.b32.xlu0 %v1147_v60, %s1294_s24 }
 0x285   :  { %v1149_v61 = vpop.permute.xlu0 %1148 }
 0x286   :  { %v1151_v62 = vunpack.i.h.bf16 %v1149_v61  ;;  %v1150_v63 = vunpack.i.l.bf16 %v1149_v61 }
 0x288   :  { %v1094_v1 = vpack.c.bf16 %v1151_v62, %v1150_v63 }
 0x28a   :  { %1096 = vmatprep.subr.msk.bf16.mxu0 %vm1463_vm2, %v1094_v1 }
 0x28b   :  { %1099 = vmatpush3.bf16.xpose.msk.msra.mxu0 %vm1463_vm2, %v1094_v1 }
 0x292   :  { %1033 = vmatmul.mubr.msk.f32.vlgmr.msra.gmra.mrb[0].mxu0 %vm311_vm1, %v287_v56 }
 0x365   :  { %v1034_v4 = vpop.f32.mrb[0].mxu0 }
 0x366   :  { %v398_v5 = vmul.f32 %v1034_v4, %v293_v2  ;;  %v388_v6 = vpop.f32.mrb[1].mxu0 }
 0x367   :  { %v397_v7 = vmul.f32 %v388_v6, %v292_v3  ;;  %v302_v6 = vld [vmem:[%s1560_s2 + $0x28] sm:$0xff] }
 0x368   :  { %v400_v8 = vand.u32 2147483647, %v398_v5 }
 0x369   :  { %v399_v9 = vand.u32 2147483647, %v397_v7 }
 0x36a   :  { %v405_v10 = vsel %vm401_vm3, %v400_v8, 0.0  ;;  %v303_v8 = vld [vmem:[%s1560_s2 + $0x30] sm:$0xff] }
 0x36b   :  { %406 = vadd.xlane.f32.xlu1 %v405_v10  ;;  %v402_v11 = vsel %vm401_vm3, %v399_v9, 0.0  ;;  %v304_v9 = vld [vmem:[%s1560_s2 + $0x38] sm:$0xff] }
 0x36c   :  { %403 = vadd.xlane.f32.xlu0 %v402_v11  ;;  %v1118_v10 = vpack.c.bf16 %v304_v9, %v303_v8  ;;  %v297_v11 = vld [vmem:[%s1560_s2] sm:$0xff] }
 0x37c   :  { %1153 = vrot.lane.b32.xlu1 %v1147_v60, %s1295_s5 }
 0x380   :  { %532 = vrot.lane.b32.xlu1 %v286_v57, %s1296_s25 }
 0x384   :  { %534 = vrot.lane.b32.xlu1 %v287_v56, %s1296_s25 }
 0x3f8   :  { %v407_v12 = vpop.xlane.xlu1 %406 }
 0x3f9   :  { %v409_v13 = vmax.f32 %v407_v12, 1.0  ;;  %v404_v14 = vpop.xlane.xlu0 %403  ;;  %v298_v12 = vld [vmem:[%s1560_s2 + $0x8] sm:$0xff] }
 0x3fa   :  { %v408_v15 = vmax.f32 %v404_v14, 1.0  ;;  %v1122_v14 = vpack.c.bf16 %v298_v12, %v297_v11 }
 0x3fb   :  { %v411_v16 = vmin.f32 %v409_v13, 50000.0  ;;  %v290_v13 = vmul.f32 0.35355338, %v1438_v39 }
 0x3fc   :  { %v410_v17 = vmin.f32 %v408_v15, 50000.0  ;;  %v1154_v18 = vpop.permute.xlu1 %1153  ;;  %v291_v15 = vmul.f32 0.35355338, %v1446_v44 }
 0x3fd   :  { %1178 = vrcp.f32 %v411_v16  ;;  %v1156_v19 = vunpack.i.h.bf16 %v1154_v18  ;;  %v1155_v20 = vunpack.i.l.bf16 %v1154_v18 }
 0x3fe   :  { %1180 = vrcp.f32 %v410_v17 }
 0x3ff   :  { %v1104_v21 = vpack.c.bf16 %v1156_v19, %v1155_v20 }
 0x400   :  { %v533_v26 = vpop.permute.xlu1 %532 }
 0x401   :  { %1106 = vmatprep.subr.msk.bf16.mxu1 %vm1463_vm2, %v1104_v21 }
 0x404   :  { %v535_v27 = vpop.permute.xlu1 %534 }
 0x407   :  { %v1179_v22 = vpop.eup %1178 }
 0x408   :  { %v1181_v23 = vpop.eup %1180  ;;  %v415_v25 = vmul.f32 %v1179_v22, %v398_v5  ;;  %v301_v5 = vld [vmem:[%s1560_s2 + $0x20] sm:$0xff] }
 0x409   :  { %v413_v24 = vmul.f32 %v1181_v23, %v397_v7  ;;  %v1114_v7 = vpack.c.bf16 %v302_v6, %v301_v5 }
 0x40b   :  { %1039 = vmatprep.mubr.msk.f32.mxu1 %vm401_vm3, %v413_v24 }
 0x40c   :  { %1040 = vmatmul.mubr.msk.f32.vlgmr.msra.gmra.mrb[6].mxu1 %vm401_vm3, %v415_v25 }
 0x40d   :  { %1109 = vmatpush3.bf16.xpose.msk.msra.mxu1 %vm1463_vm2, %v1104_v21  ;;  %1046 = vmatprep.mubr.msk.f32.mxu1 %vm311_vm1, %v533_v26 }
 0x414   :  { %1047 = vmatmul.mubr.msk.f32.vlgmr.msra.gmra.mrb[8].mxu1 %vm311_vm1, %v535_v27 }
 0x4df   :  { %v1482_v28 = vpop.f32.mrb[6].mxu1 }
 0x4e0   :  { %v1484_v29 = vpop.f32.mrb[7].mxu1  ;;  %v498_v2 = vmul.f32 %v1482_v28, %v1482_v28 }
 0x4e1   :  { %v497_v63 = vmul.f32 %v1484_v29, %v1484_v29 }
 0x4e2   :  { %v502_v4 = vsel %vm81_vm0, %v498_v2, 0.0 }
 0x4e3   :  { %v499_v3 = vsel %vm81_vm0, %v497_v63, 0.0 }
 0x4e7   :  { %v1048_v32 = vpop.f32.mrb[8].mxu1 }
 0x4e8   :  { %v624_v33 = vmul.f32 %v1048_v32, %v295_v30  ;;  %v614_v34 = vpop.f32.mrb[9].mxu1 }
 0x4e9   :  { %v623_v35 = vmul.f32 %v614_v34, %v294_v31 }
 0x4ea   :  { %v626_v36 = vand.u32 2147483647, %v624_v33 }
 0x4eb   :  { %v625_v37 = vand.u32 2147483647, %v623_v35 }
 0x4ec   :  { %v630_v38 = vsel %vm401_vm3, %v626_v36, 0.0  ;;  %v300_v36 = vld [vmem:[%s1560_s2 + $0x18] sm:$0xff] }
 0x4ed   :  { %631 = vadd.xlane.f32.xlu0 %v630_v38  ;;  %v627_v40 = vsel %vm401_vm3, %v625_v37, 0.0 }
 0x4ee   :  { %628 = vadd.xlane.f32.xlu1 %v627_v40 }
 0x503   :  { %1158 = vrot.lane.b32.xlu0 %v1157_v41, %s1297_s26 }
 0x57a   :  { %v632_v45 = vpop.xlane.xlu0 %631 }
 0x57b   :  { %v634_v46 = vmax.f32 %v632_v45, 1.0  ;;  %v629_v47 = vpop.xlane.xlu1 %628 }
 0x57c   :  { %v633_v48 = vmax.f32 %v629_v47, 1.0 }
 0x57d   :  { %v636_v49 = vmin.f32 %v634_v46, 50000.0 }
 0x57e   :  { %v635_v50 = vmin.f32 %v633_v48, 50000.0  ;;  %v1159_v51 = vpop.permute.xlu0 %1158 }
 0x57f   :  { %1182 = vrcp.f32 %v636_v49  ;;  %v1161_v52 = vunpack.i.h.bf16 %v1159_v51  ;;  %v1160_v53 = vunpack.i.l.bf16 %v1159_v51 }
 0x580   :  { %1184 = vrcp.f32 %v635_v50 }
 0x581   :  { %v1110_v54 = vpack.c.bf16 %v1161_v52, %v1160_v53 }
 0x583   :  { %1111 = vmatprep.subr.bf16.mxu0 %v1110_v54 }
 0x584   :  { %1113 = vmatpush3.bf16.msra.mxu0 %v1110_v54 }
 0x585   :  { %1115 = vmatprep.subr.bf16.mxu0 %v1114_v7 }
 0x589   :  { %v1183_v55 = vpop.eup %1182 }
 0x58a   :  { %v1185_v56 = vpop.eup %1184  ;;  %v640_v58 = vmul.f32 %v1183_v55, %v624_v33 }
 0x58b   :  { %v638_v57 = vmul.f32 %v1185_v56, %v623_v35  ;;  %v299_v35 = vld [vmem:[%s1560_s2 + $0x10] sm:$0xff]  ;;  %s1302_s2 = smov [#allocation8]  }
 0x58c   :  { %v1126_v46 = vpack.c.bf16 %v300_v36, %v299_v35 }
 0x58d   :  { %1053 = vmatprep.mubr.msk.f32.mxu0 %vm401_vm3, %v638_v57 }
 0x58e   :  { %1054 = vmatmul.mubr.msk.f32.vlgmr.msra.gmra.mrb[2].mxu0 %vm401_vm3, %v640_v58 }
 0x58f   :  { %1117 = vmatpush3.bf16.msra.mxu0 %v1114_v7 }
 0x590   :  { %1119 = vmatprep.subr.bf16.mxu0 %v1118_v10 }
 0x593   :  { %1121 = vmatpush3.bf16.msra.mxu0 %v1118_v10 }
 0x594   :  { %1123 = vmatprep.subr.bf16.mxu0 %v1122_v14 }
 0x661   :  { %v1055_v59 = vpop.f32.mrb[2].mxu0 }
 0x662   :  { %v729_v60 = vmul.f32 %v1055_v59, %v1055_v59  ;;  %v719_v61 = vpop.f32.mrb[3].mxu0 }
 0x663   :  { %v728_v62 = vmul.f32 %v719_v61, %v719_v61 }
 0x664   :  { %v733_v0 = vsel %vm81_vm0, %v729_v60, 0.0 }
 0x665   :  { %734 = vadd.xlane.f32.xlu1 %v733_v0  ;;  %v730_v1 = vsel %vm81_vm0, %v728_v62, 0.0 }
 0x666   :  { %731 = vadd.xlane.f32.xlu0 %v730_v1 }
 0x669   :  { %500 = vadd.xlane.f32.xlu1 %v499_v3 }
 0x66d   :  { %503 = vadd.xlane.f32.xlu1 %v502_v4 }
 0x67c   :  { %748 = vrot.lane.b32.xlu0 %v1444_v43, %s1298_s6 }
 0x67e   :  { %746 = vrot.lane.b32.xlu1 %v1442_v42, %s1298_s6 }
 0x680   :  { %926 = vrot.lane.b32.xlu0 %v1444_v43, %s1299_s9 }
 0x682   :  { %524 = vrot.lane.b32.xlu1 %v1442_v42, %s1300_s10 }
 0x686   :  { %526 = vrot.lane.b32.xlu1 %v1444_v43, %s1300_s10 }
 0x68a   :  { %918 = vrot.lane.b32.xlu1 %v290_v13, %s1301_s20 }
 0x68e   :  { %920 = vrot.lane.b32.xlu1 %v291_v15, %s1301_s20 }
 0x692   :  { %924 = vrot.lane.b32.xlu1 %v1442_v42, %s1299_s9  ;;  %v972_v42 = vld [vmem:[%s1565_s7] ss:$0 sm:$0xff]  ;;  %s945_s7 = sshll.u32 %s1302_s2, 4  ;;  %s946_s7 = int_to_ptr.vmem [resolvable:$true] %s945_s7 }
 0x693   :  { %s1260_s24 = scalar_lea.vmem %s946_s7, 256  ;;  %p1265_p11 = scmp.lt.s32.totalorder %s946_s7, %s946_s7 }
 0x694   :  { %p1261_p10 = scmp.ne.s32.totalorder %s946_s7, %s1260_s24  ;;  %p1266_p12 = scmp.lt.s32.totalorder %s1260_s24, %s1260_s24 }
 0x696   :  { %p1267_p13 = por %p1266_p12, %p1265_p11 }
 0x698   :  { %p1268_p0 = pnand %p1267_p13, %p1261_p10 }
 0x6f2   :  { %v735_v43 = vpop.xlane.xlu1 %734 }
 0x6f3   :  { %v737_v16 = vmul.f32 0.03125, %v735_v43  ;;  %v732_v17 = vpop.xlane.xlu0 %731 }
 0x6f4   :  { %v736_v18 = vmul.f32 0.03125, %v732_v17 }
 0x6f5   :  { %v739_v19 = vadd.f32 1e-06, %v737_v16 }
 0x6f6   :  { %v738_v20 = vadd.f32 1e-06, %v736_v18  ;;  %v501_v21 = vpop.xlane.xlu1 %500 }
 0x6f7   :  { %1186 = vrsqrt.f32 %v739_v19  ;;  %v506_v22 = vmul.f32 0.03125, %v501_v21  ;;  %v749_v38 = vpop.permute.xlu0 %748 }
 0x6f8   :  { %1188 = vrsqrt.f32 %v738_v20 }
 0x6f9   :  { %v508_v39 = vadd.f32 1e-06, %v506_v22 }
 0x6fa   :  { %v504_v23 = vpop.xlane.xlu1 %503 }
 0x6fb   :  { %1190 = vrsqrt.f32 %v508_v39  ;;  %v507_v24 = vmul.f32 0.03125, %v504_v23 }
 0x6fd   :  { %v509_v25 = vadd.f32 1e-06, %v507_v24 }
 0x6fe   :  { %v747_v31 = vpop.permute.xlu1 %746 }
 0x6ff   :  { %1192 = vrsqrt.f32 %v509_v25 }
 0x701   :  { %v1187_v44 = vpop.eup %1186 }
 0x702   :  { %v1189_v26 = vpop.eup %1188  ;;  %v743_v27 = vmul.f32 %v1187_v44, %v1055_v59  ;;  %v525_v48 = vpop.permute.xlu1 %524 }
 0x703   :  { %v742_v30 = vmul.f32 %v1189_v26, %v719_v61 }
 0x704   :  { %v745_v32 = vmul.f32 %v972_v42, %v743_v27 }
 0x705   :  { %v1191_v33 = vpop.eup %1190  ;;  %v744_v34 = vmul.f32 %v972_v42, %v742_v30 }
 0x706   :  { %v512_v37 = vmul.f32 %v1191_v33, %v1484_v29  ;;  %v753_v41 = vmul.f32 %v749_v38, %v745_v32  ;;  %v527_v29 = vpop.permute.xlu1 %526 }
 0x707   :  { %v752_v40 = vmul.f32 %v747_v31, %v744_v34 }
 0x708   :  { %v520_v45 = vmul.f32 %v972_v42, %v512_v37 }
 0x709   :  { %v1193_v47 = vpop.eup %1192  ;;  %1064 = vmatprep.mubr.msk.f32.mxu0 %vm81_vm0, %v752_v40 }
 0x70a   :  { %v530_v49 = vmul.f32 %v525_v48, %v520_v45  ;;  %v513_v50 = vmul.f32 %v1193_v47, %v1482_v28  ;;  %1065 = vmatmul.mubr.msk.f32.vlgmr.msra.gmra.mrb[4].mxu0 %vm81_vm0, %v753_v41  ;;  %v919_v53 = vpop.permute.xlu1 %918  ;;  %v927_v28 = vpop.permute.xlu0 %926 }
 0x70b   :  { %1125 = vmatpush3.bf16.msra.mxu0 %v1122_v14 }
 0x70c   :  { %v521_v51 = vmul.f32 %v972_v42, %v513_v50  ;;  %1075 = vmatprep.mubr.msk.f32.mxu0 %vm81_vm0, %v530_v49  ;;  %1127 = vmatprep.subr.bf16.mxu0 %v1126_v46 }
 0x70e   :  { %v531_v52 = vmul.f32 %v527_v29, %v521_v51  ;;  %v921_v54 = vpop.permute.xlu1 %920 }
 0x70f   :  { %1129 = vmatpush3.bf16.msra.mxu0 %v1126_v46 }
 0x712   :  { %1076 = vmatmul.mubr.msk.f32.vlgmr.msra.gmra.mrb[4].mxu0 %vm81_vm0, %v531_v52  ;;  %v925_v58 = vpop.permute.xlu1 %924 }
 0x7e5   :  { %v1077_v55 = vpop.f32.mrb[4].mxu0 }
 0x7e6   :  { %v931_v56 = vsel %vm81_vm0, %v1077_v55, %v921_v54  ;;  %v907_v57 = vpop.f32.mrb[5].mxu0 }
 0x7e7   :  { %v934_v59 = vsel %vm932_vm4, %v931_v56, %v927_v28  ;;  %v930_v60 = vsel %vm81_vm0, %v907_v57, %v919_v53 }
 0x7e8   :  { %v933_v61 = vsel %vm932_vm4, %v930_v60, %v925_v58  ;;  %v937_v62 = vsel %vm935_vm5, %v934_v59, 0.0 }
 0x7e9   :  { %v936_v63 = vsel %vm935_vm5, %v933_v61, 0.0  ;;  %939 = vst [vmem:[#allocation8 + $0x8] sm:$0xff] %v937_v62 }
 0x7ea   :  { %938 = vst [vmem:[#allocation8] sm:$0xff] %v936_v63 }
 0x7eb   :  { %1271 = shalt.err (!%p1268_p0)
}
 0x7ec   :  { %s1272_s26 = scalar_lea.hbm %s1566_s8, 256 }
 0x7ed   :  { %p1273_p1 = scmp.ne.s32.totalorder %s1566_s8, %s1272_s26  ;;  %p1276_p2 = scmp.lt.u32.totalorder %s1272_s26, %s1566_s8 }
 0x7ef   :  { %p1278_p3 = pnand %p1276_p2, %p1273_p1 }
 0x7f1   :  { %1281 = shalt.err (!%p1278_p3)
}
 0x7f2   :  { %951 = dma.vmem_to_hbm [thread:$0]  %s946_s7, 256, %s1566_s8, [#allocation4], %s1290_s17, %s1290_s17, %s1291_s18  }
 0x7f3   :  { %1286 = dma.done.wait [#allocation4], 256  }
 0x7f4   :  { %1287 = vsyncadd [#allocation4], 4294967040 }
 0x7f5   :  { %955 = vsyncpa [#allocation3], 1 }
 0x7f6   :  { %956 = vsyncpa [#allocation6], 1 }
 0x7f7   :  { %957 = vsyncpa [#allocation4], 1 }

</bundles_post_ra>
